<compile_context>
chip_gen: v6e
topology: v6e:2x2x1
jax: 0.10.0
libtpu: 0.0.40
codegen_flags: <defaults>
</compile_context>

<pallas_src>
import functools

import jax
import jax.numpy as jnp
from jax.experimental import pallas as pl
from jax.experimental.pallas import tpu as pltpu

_LANE = 128
_SUBLANE_BF16 = 16      # bf16 packs 2 rows/sublane -> round batch tiles to 16
_DEFAULT_TB = 256       # 256-aligned M tiles keep v6e/v7x 256x256 MXU pushes full


def _round_up(n, m):
    return ((n + m - 1) // m) * m


def _apply_activation(z, activation):
    # Activations kept in f32 (v5e has no bf16 VPU/EUP); cast to bf16 only at
    # the matmul inputs.
    if activation == "tanh":
        return jnp.tanh(z)
    if activation == "relu":
        return jnp.maximum(z, 0.0)
    if activation == "sigmoid":
        return jax.nn.sigmoid(z)
    if activation == "selu":
        # PyTorch module maps 'selu' -> F.elu (alpha=1.0).
        # TODO(synk): custom VJP needed if this kernel is ever differentiated
        # (expm1 evaluated on the discarded branch -> NaN grads otherwise).
        return jnp.where(z > 0, z, jnp.expm1(z))
    raise ValueError(f"unknown activation {activation}")


def _mlp_fused_kernel(*refs, n_hidden, activation, scalar_head):
    # refs = (x, w0, b0, w1, b1, ..., w_out, b_out, o)
    x_ref = refs[0]
    o_ref = refs[-1]
    wb = refs[1:-1]

    h = x_ref[...]                                        # (TB, D0_pad) f32
    for i in range(n_hidden):                             # straight-line unroll
        w = wb[2 * i][...]                                # (Din_pad, Dout_pad) bf16
        b = wb[2 * i + 1][...]                            # (1, Dout_pad) f32
        z = jnp.dot(h.astype(jnp.bfloat16), w,
                    preferred_element_type=jnp.float32) + b
        h = _apply_activation(z, activation)

    w_out = wb[2 * n_hidden][...]
    b_out = wb[2 * n_hidden + 1][...]
    if scalar_head:
        # output_size == 1: an N=1 matmul wastes the whole MXU; VPU multiply +
        # lane reduction instead.  w_out is stored lane-dense as (1, H_pad).
        z = jnp.sum(h * w_out.astype(jnp.float32), axis=-1, keepdims=True) + b_out
    else:
        z = jnp.dot(h.astype(jnp.bfloat16), w_out,
                    preferred_element_type=jnp.float32) + b_out
    o_ref[...] = z.astype(o_ref.dtype)


def prepare_mlp_params(params, input_size, output_size):
    """One-time host-side prep (call once and cache).

    Zero-pads every layer to lane-dense (multiple-of-128) widths and casts
    weights to bf16.  Padded weight rows/cols are zero, so padded lanes never
    contribute to the result.  Biases stay f32 (added to the f32 accumulator).
    """
    n_layers = len(params)
    scalar_head = (output_size == 1)
    din_pad = _round_up(input_size, _LANE)

    layers = []
    dims = [din_pad]
    prev_pad = din_pad
    for li, (w, b) in enumerate(params):
        w = jnp.asarray(w, jnp.float32)
        b = jnp.asarray(b, jnp.float32).reshape(-1)
        din, dout = w.shape
        is_last = (li == n_layers - 1)
        if is_last and scalar_head:
            # Head weight (din, 1) stored lane-dense as a (1, din_pad) row.
            w_p = jnp.pad(w[:, 0][None, :], ((0, 0), (0, prev_pad - din)))
            b_p = b.reshape(1, 1)
            out_pad = 1
        else:
            out_pad = _round_up(dout, _LANE)
            w_p = jnp.pad(w, ((0, prev_pad - din), (0, out_pad - dout)))
            b_p = jnp.pad(b, (0, out_pad - dout)).reshape(1, out_pad)
        layers.append((w_p.astype(jnp.bfloat16), b_p.astype(jnp.float32)))
        dims.append(out_pad)
        prev_pad = out_pad

    return {
        "layers": layers,
        "dims": dims,              # [din_pad, h0_pad, ..., out_pad]
        "scalar_head": scalar_head,
        "n_hidden": n_layers - 1,
    }


def mlp_forward(prepared, x, input_size, output_size, activation="tanh",
                tile_b=_DEFAULT_TB):
    """Forward pass: whole MLP in one gridded pallas_call (grid over batch)."""
    x = jnp.asarray(x, jnp.float32).reshape(-1, input_size)   # x.view(-1, input_size)
    B = x.shape[0]

    layers = prepared["layers"]
    dims = prepared["dims"]
    scalar_head = prepared["scalar_head"]
    n_hidden = prepared["n_hidden"]
    din_pad, out_pad = dims[0], dims[-1]

    # Batch tiling: 256-row tiles unless the batch is smaller; always a
    # multiple of 16 (bf16 sublane packing).  B_pad is a multiple of TB so no
    # edge tiles.
    TB = min(tile_b, _round_up(B, _SUBLANE_BF16))
    B_pad = _round_up(B, TB)
    nb = B_pad // TB

    # Single pad op for x (vs zeros+scatter per call).
    x_p = jnp.pad(x, ((0, B_pad - B), (0, din_pad - input_size)))

    kernel_args = [x_p]
    in_specs = [pl.BlockSpec((TB, din_pad), lambda i: (i, 0))]
    for (w_p, b_p) in layers:
        kernel_args += [w_p, b_p]
        # Constant index_map -> same block revisited on every batch tile, so
        # Mosaic keeps weights/biases resident in VMEM (no re-DMA).
        in_specs += [pl.BlockSpec(w_p.shape, lambda i: (0, 0)),
                     pl.BlockSpec(b_p.shape, lambda i: (0, 0))]

    kernel = functools.partial(
        _mlp_fused_kernel,
        n_hidden=n_hidden,
        activation=activation,
        scalar_head=scalar_head,
    )

    # Advisory cost estimate (padded sizes) so XLA schedules the surrounding
    # pad / output slice sensibly around the custom call.
    flops = 0
    for li in range(n_hidden):
        flops += 2 * B_pad * dims[li] * dims[li + 1]
    flops += 2 * B_pad * dims[n_hidden] * (1 if scalar_head else dims[-1])
    transcendentals = 0 if activation == "relu" else B_pad * sum(dims[1:1 + n_hidden])
    weight_bytes = sum(int(w.size) * w.dtype.itemsize + int(b.size) * b.dtype.itemsize
                       for w, b in layers)
    bytes_accessed = int(x_p.size) * 4 + weight_bytes + B_pad * out_pad * 4
    cost = pl.CostEstimate(flops=int(flops),
                           transcendentals=int(transcendentals),
                           bytes_accessed=int(bytes_accessed))

    # VMEM budgeting against the tightest chip (v7x: 64 MiB physical, 32 MiB
    # default scoped): resident weights + double-buffered x/out tiles + live
    # activations.  Raise the scoped limit only when actually needed.
    # TODO(synk): tile K/N per layer (pltpu.emit_pipeline) once weights
    # outgrow the weights-resident budget.
    tile_bytes = TB * din_pad * 4 + TB * out_pad * 4
    act_bytes = TB * max(dims) * 4
    vmem_est = weight_bytes + 2 * tile_bytes + 2 * act_bytes
    compiler_kwargs = dict(dimension_semantics=("parallel",))  # shards B tiles
    if vmem_est > 12 << 20:                                    # above v5e default scoped
        compiler_kwargs["vmem_limit_bytes"] = min(2 * vmem_est, 48 << 20)

    out_p = pl.pallas_call(
        kernel,
        out_shape=jax.ShapeDtypeStruct((B_pad, out_pad), jnp.float32),
        grid=(nb,),
        in_specs=in_specs,
        out_specs=pl.BlockSpec((TB, out_pad), lambda i: (i, 0)),
        compiler_params=pltpu.CompilerParams(**compiler_kwargs),
        cost_estimate=cost,
    )(*kernel_args)

    if scalar_head:
        return out_p[:B, 0]                # z.flatten()
    return out_p[:B, :output_size]


def init_mlp_params(key, input_size, hidden_sizes, output_size):
    """Deterministic init mirroring nn.Linear shapes (stored as (in, out))."""
    sizes = [input_size] + list(hidden_sizes) + [output_size]
    params = []
    for i in range(len(sizes) - 1):
        fan_in, fan_out = sizes[i], sizes[i + 1]
        key, kw, kb = jax.random.split(key, 3)
        bound = 1.0 / jnp.sqrt(fan_in)
        w = jax.random.uniform(kw, (fan_in, fan_out), jnp.float32, -bound, bound)
        b = jax.random.uniform(kb, (1, fan_out), jnp.float32, -bound, bound)
        params.append((w, b))
    return params


def mlp_reference(params, x, input_size, output_size, activation="tanh"):
    x = x.reshape(-1, input_size).astype(jnp.float32)
    out = x
    for w, b in params[:-1]:
        out = _apply_activation(out @ w + b[0], activation)
    w, b = params[-1]
    z = out @ w + b[0]
    return z.reshape(-1) if output_size == 1 else z


if __name__ == "__main__":
    key = jax.random.PRNGKey(0)

    # Case 1: scalar head (output_size=1 -> flattened output), tanh.
    input_size, hidden_sizes, output_size, batch = 32, [64, 32], 1, 8
    kp, kx, key = jax.random.split(key, 3)
    params = init_mlp_params(kp, input_size, hidden_sizes, output_size)
    prepared = prepare_mlp_params(params, input_size, output_size)   # once, cached
    x = jax.random.normal(kx, (batch, input_size), jnp.float32)

    out = mlp_forward(prepared, x, input_size, output_size, activation="tanh")
    out = jax.block_until_ready(out)
    ref = mlp_reference(params, x, input_size, output_size, activation="tanh")
    assert out.shape == (batch,), out.shape
    assert jnp.allclose(out, ref, atol=2e-2, rtol=2e-2), "mismatch vs reference (scalar head)"

    # Case 2: vector head (output_size>1 -> matmul head), tanh.
    output_size2 = 4
    kp2, kx2 = jax.random.split(key)
    params2 = init_mlp_params(kp2, input_size, hidden_sizes, output_size2)
    prepared2 = prepare_mlp_params(params2, input_size, output_size2)
    x2 = jax.random.normal(kx2, (batch, input_size), jnp.float32)

    out2 = mlp_forward(prepared2, x2, input_size, output_size2, activation="tanh")
    out2 = jax.block_until_ready(out2)
    ref2 = mlp_reference(params2, x2, input_size, output_size2, activation="tanh")
    assert out2.shape == (batch, output_size2), out2.shape
    assert jnp.allclose(out2, ref2, atol=2e-2, rtol=2e-2), "mismatch vs reference (vector head)"

    print("KERNEL_OK")
</pallas_src>

<mosaic_0001>
module attributes {stable_mosaic.version = 11 : i64} {
  func.func @_mlp_fused_kernel(%arg0: i32, %arg1: memref<16x128xf32, #tpu.memory_space<vmem>>, %arg2: memref<128x128xbf16, #tpu.memory_space<vmem>>, %arg3: memref<1x128xf32, #tpu.memory_space<vmem>>, %arg4: memref<128x128xbf16, #tpu.memory_space<vmem>>, %arg5: memref<1x128xf32, #tpu.memory_space<vmem>>, %arg6: memref<1x128xbf16, #tpu.memory_space<vmem>>, %arg7: memref<1x1xf32, #tpu.memory_space<vmem>>, %arg8: memref<16x1xf32, #tpu.memory_space<vmem>>) attributes {dimension_semantics = [#tpu.dimension_semantics<parallel>], iteration_bounds = array<i64: 1>, scalar_prefetch = 0 : i64, scratch_operands = 0 : i64, tpu.core_type = #tpu.core_type<tc>, window_params = [{transform_indices = @transform_0, window_bounds = array<i64: 16, 128>}, {pipeline_mode = #tpu.pipeline_mode<synchronous>, transform_indices = @transform_1, window_bounds = array<i64: 128, 128>}, {pipeline_mode = #tpu.pipeline_mode<synchronous>, transform_indices = @transform_2, window_bounds = array<i64: 1, 128>}, {pipeline_mode = #tpu.pipeline_mode<synchronous>, transform_indices = @transform_3, window_bounds = array<i64: 128, 128>}, {pipeline_mode = #tpu.pipeline_mode<synchronous>, transform_indices = @transform_4, window_bounds = array<i64: 1, 128>}, {pipeline_mode = #tpu.pipeline_mode<synchronous>, transform_indices = @transform_5, window_bounds = array<i64: 1, 128>}, {pipeline_mode = #tpu.pipeline_mode<synchronous>, transform_indices = @transform_6, window_bounds = array<i64: 1, 1>}, {transform_indices = @transform_7, window_bounds = array<i64: 16, 1>}]} {
    %c0 = arith.constant 0 : index
    %c0_0 = arith.constant 0 : index
    %0 = vector.load %arg1[%c0, %c0_0] : memref<16x128xf32, #tpu.memory_space<vmem>>, vector<16x128xf32>
    %c0_1 = arith.constant 0 : index
    %c0_2 = arith.constant 0 : index
    %1 = vector.load %arg2[%c0_1, %c0_2] : memref<128x128xbf16, #tpu.memory_space<vmem>>, vector<128x128xbf16>
    %c0_3 = arith.constant 0 : index
    %c0_4 = arith.constant 0 : index
    %2 = vector.load %arg3[%c0_3, %c0_4] : memref<1x128xf32, #tpu.memory_space<vmem>>, vector<1x128xf32>
    %3 = arith.truncf %0 : vector<16x128xf32> to vector<16x128xbf16>
    %cst = arith.constant dense<0.000000e+00> : vector<16x128xf32>
    %4 = tpu.matmul %3, %1, %cst {dimension_numbers = #tpu.dot_dimension_numbers<[1], [0], [0], [1], [0, 0, 1, 1], [], []>} : vector<16x128xbf16>, vector<128x128xbf16>, vector<16x128xf32> -> vector<16x128xf32>
    %5 = vector.broadcast %2 : vector<1x128xf32> to vector<16x128xf32>
    %6 = arith.addf %4, %5 : vector<16x128xf32>
    %7 = math.tanh %6 : vector<16x128xf32>
    %c0_5 = arith.constant 0 : index
    %c0_6 = arith.constant 0 : index
    %8 = vector.load %arg4[%c0_5, %c0_6] : memref<128x128xbf16, #tpu.memory_space<vmem>>, vector<128x128xbf16>
    %c0_7 = arith.constant 0 : index
    %c0_8 = arith.constant 0 : index
    %9 = vector.load %arg5[%c0_7, %c0_8] : memref<1x128xf32, #tpu.memory_space<vmem>>, vector<1x128xf32>
    %10 = arith.truncf %7 : vector<16x128xf32> to vector<16x128xbf16>
    %cst_9 = arith.constant dense<0.000000e+00> : vector<16x128xf32>
    %11 = tpu.matmul %10, %8, %cst_9 {dimension_numbers = #tpu.dot_dimension_numbers<[1], [0], [0], [1], [0, 0, 1, 1], [], []>} : vector<16x128xbf16>, vector<128x128xbf16>, vector<16x128xf32> -> vector<16x128xf32>
    %12 = vector.broadcast %9 : vector<1x128xf32> to vector<16x128xf32>
    %13 = arith.addf %11, %12 : vector<16x128xf32>
    %14 = math.tanh %13 : vector<16x128xf32>
    %c0_10 = arith.constant 0 : index
    %c0_11 = arith.constant 0 : index
    %15 = vector.load %arg6[%c0_10, %c0_11] : memref<1x128xbf16, #tpu.memory_space<vmem>>, vector<1x128xbf16>
    %c0_12 = arith.constant 0 : index
    %c0_13 = arith.constant 0 : index
    %16 = vector.load %arg7[%c0_12, %c0_13] : memref<1x1xf32, #tpu.memory_space<vmem>>, vector<1x1xf32>
    %17 = arith.extf %15 : vector<1x128xbf16> to vector<1x128xf32>
    %18 = vector.broadcast %17 : vector<1x128xf32> to vector<16x128xf32>
    %19 = arith.mulf %14, %18 : vector<16x128xf32>
    %cst_14 = arith.constant dense<0.000000e+00> : vector<16xf32>
    %20 = vector.multi_reduction <add>, %19, %cst_14 [1] : vector<16x128xf32> to vector<16xf32>
    %21 = vector.shape_cast %20 : vector<16xf32> to vector<16x1xf32>
    %22 = vector.broadcast %16 : vector<1x1xf32> to vector<16x1xf32>
    %23 = arith.addf %21, %22 : vector<16x1xf32>
    %c0_15 = arith.constant 0 : index
    %c0_16 = arith.constant 0 : index
    %24 = vector.load %arg8[%c0_15, %c0_16] : memref<16x1xf32, #tpu.memory_space<vmem>>, vector<16x1xf32>
    tpu.vector_store %arg8[%c0_15, %c0_16], %23 {strides = array<i32>} : memref<16x1xf32, #tpu.memory_space<vmem>>, vector<16x1xf32>,
    return
  }
  func.func @transform_0(%arg0: i32) -> (i32, i32) {
    %c0_i32 = arith.constant 0 : i32
    %c0_i32_0 = arith.constant 0 : i32
    return %arg0, %c0_i32 : i32, i32
  }
  func.func @transform_1(%arg0: i32) -> (i32, i32) {
    %c0_i32 = arith.constant 0 : i32
    %c0_i32_0 = arith.constant 0 : i32
    %c0_i32_1 = arith.constant 0 : i32
    return %c0_i32, %c0_i32_0 : i32, i32
  }
  func.func @transform_2(%arg0: i32) -> (i32, i32) {
    %c0_i32 = arith.constant 0 : i32
    %c0_i32_0 = arith.constant 0 : i32
    %c0_i32_1 = arith.constant 0 : i32
    return %c0_i32, %c0_i32_0 : i32, i32
  }
  func.func @transform_3(%arg0: i32) -> (i32, i32) {
    %c0_i32 = arith.constant 0 : i32
    %c0_i32_0 = arith.constant 0 : i32
    %c0_i32_1 = arith.constant 0 : i32
    return %c0_i32, %c0_i32_0 : i32, i32
  }
  func.func @transform_4(%arg0: i32) -> (i32, i32) {
    %c0_i32 = arith.constant 0 : i32
    %c0_i32_0 = arith.constant 0 : i32
    %c0_i32_1 = arith.constant 0 : i32
    return %c0_i32, %c0_i32_0 : i32, i32
  }
  func.func @transform_5(%arg0: i32) -> (i32, i32) {
    %c0_i32 = arith.constant 0 : i32
    %c0_i32_0 = arith.constant 0 : i32
    %c0_i32_1 = arith.constant 0 : i32
    return %c0_i32, %c0_i32_0 : i32, i32
  }
  func.func @transform_6(%arg0: i32) -> (i32, i32) {
    %c0_i32 = arith.constant 0 : i32
    %c0_i32_0 = arith.constant 0 : i32
    %c0_i32_1 = arith.constant 0 : i32
    return %c0_i32, %c0_i32_0 : i32, i32
  }
  func.func @transform_7(%arg0: i32) -> (i32, i32) {
    %c0_i32 = arith.constant 0 : i32
    %c0_i32_0 = arith.constant 0 : i32
    return %arg0, %c0_i32 : i32, i32
  }
}

</mosaic_0001>

<bundles_post_ra>
// kernel: tpu_custom_call.1
= control target key start
LH: loop header
LB: loop body
LE: loop exit
PB: predicated region body
PF: predicated region fallthrough
CT: control target
= control target key end

     0   :  { %s582_s0 = inlined_call_operand.hbm [shape: f32[16,128], index: 0, kind: input, shape index: {}]   ;;  %s583_s1 = inlined_call_operand.hbm [shape: bf16[128,128], index: 1, kind: input, shape index: {}]   ;;  %s584_s2 = inlined_call_operand.vmem [shape: f32[1,128], index: 2, kind: input, shape index: {}]   ;;  %s585_s3 = inlined_call_operand.hbm [shape: bf16[128,128], index: 3, kind: input, shape index: {}]   ;;  %s586_s4 = inlined_call_operand.vmem [shape: f32[1,128], index: 4, kind: input, shape index: {}]   ;;  %s587_s5 = inlined_call_operand.vmem [shape: bf16[1,128], index: 5, kind: input, shape index: {}]   ;;  %s588_s6 = inlined_call_operand.<no memory space> [shape: f32[1,1], index: 6, kind: input, shape index: {}]   ;;  %s589_s7 = inlined_call_operand.vmem [shape: f32[16,1], index: 7, kind: output, shape index: {}]  }
   0x1   :  { %v12_v0 = vstv %s588_s6 }
   0x2   :  { %13 = vst [vmem:[#allocation2] sm:$0x1] %v12_v0 }
   0x3   :  { %14 = vsyncpa [#allocation4], 0 }
   0x4   :  { %15 = vsyncpa [#allocation6], 0  ;;  %s506_s26 = smov [#allocation5]  }
   0x5   :  { %s33_s27 = sshll.u32 %s506_s26, 4  ;;  %s34_s27 = int_to_ptr.vmem [resolvable:$true] %s33_s27 }
   0x6   :  { %s450_s28 = scalar_lea.vmem %s34_s27, 1024  ;;  %p455_p1 = scmp.lt.s32.totalorder %s34_s27, %s34_s27 }
   0x7   :  { %p451_p0 = scmp.ne.s32.totalorder %s34_s27, %s450_s28  ;;  %p456_p2 = scmp.lt.s32.totalorder %s450_s28, %s450_s28 }
   0x9   :  { %p457_p3 = por %p456_p2, %p455_p1 }
   0xb   :  { %p458_p4 = pnand %p457_p3, %p451_p0 }
   0xd   :  { %461 = shalt.err (!%p458_p4)
}
   0xe   :  { %s507_s29 = smov 64   ;;  %s508_s30 = smov 4  }
   0xf   :  { %39 = dma.hbm_to_vmem [thread:$0]  %s583_s1, 1024, %s34_s27, [#allocation6], %s507_s29, %s507_s29, %s508_s30  }
  0x10   :  { %s509_s6 = smov [#allocation3]  }
  0x11   :  { %s21_s10 = sshll.u32 %s509_s6, 4  ;;  %s22_s10 = int_to_ptr.vmem [resolvable:$true] %s21_s10 }
  0x12   :  { %s470_s11 = scalar_lea.vmem %s22_s10, 256  ;;  %p475_p6 = scmp.lt.s32.totalorder %s22_s10, %s22_s10 }
  0x13   :  { %p471_p5 = scmp.ne.s32.totalorder %s22_s10, %s470_s11  ;;  %p476_p7 = scmp.lt.s32.totalorder %s470_s11, %s470_s11 }
  0x15   :  { %p477_p8 = por %p476_p7, %p475_p6 }
  0x17   :  { %p478_p9 = pnand %p477_p8, %p471_p5 }
  0x19   :  { %481 = shalt.err (!%p478_p9)
}
  0x1a   :  { %s510_s12 = smov 128   ;;  %s511_s13 = smov 8  }
  0x1b   :  { %27 = dma.hbm_to_vmem [thread:$0]  %s582_s0, 256, %s22_s10, [#allocation4], %s510_s12, %s510_s12, %s511_s13  }
  0x1c   :  { %s512_s16 = smov [#allocation7]  }
  0x1d   :  { %s47_s17 = sshll.u32 %s512_s16, 4  ;;  %s48_s17 = int_to_ptr.vmem [resolvable:$true] %s47_s17 }
  0x1e   :  { %s490_s1 = scalar_lea.vmem %s48_s17, 1024  ;;  %p495_p11 = scmp.lt.s32.totalorder %s48_s17, %s48_s17 }
  0x1f   :  { %p491_p10 = scmp.ne.s32.totalorder %s48_s17, %s490_s1  ;;  %p496_p12 = scmp.lt.s32.totalorder %s490_s1, %s490_s1 }
  0x21   :  { %p497_p13 = por %p496_p12, %p495_p11 }
  0x23   :  { %p498_p0 = pnand %p497_p13, %p491_p10 }
  0x25   :  { %501 = shalt.err (!%p498_p0)
}
  0x26   :  { %53 = dma.hbm_to_vmem [thread:$0]  %s585_s3, 1024, %s48_s17, [#allocation6], %s507_s29, %s507_s29, %s508_s30  }
  0x27   :  { %502 = dma.done.wait [#allocation4], 256  }
  0x28   :  { %503 = vsyncadd [#allocation4], 4294967040 }
  0x29   :  { %504 = dma.done.wait [#allocation6], 2048  }
  0x2a   :  { %505 = vsyncadd [#allocation6], 4294965248  ;;  %v513_v1 = vmov 0.0   ;;  %vm514_vm0 = vmmov 0   ;;  %v418_v2 = vld [vmem:[#allocation5 + $0x38] sm:$0xff]   ;;  %v419_v3 = vld [vmem:[#allocation5 + $0x30] sm:$0xff]   ;;  %v305_v34 = vlaneseq }
  0x2b   :  { %369 = vmatprep.subr.bf16.mxu0 %v513_v1  ;;  %385 = vmatprep.mubr.msk.bf16.mxu0 %vm514_vm0, %v513_v1  ;;  %v420_v4 = vld [vmem:[#allocation5 + $0x28] sm:$0xff]   ;;  %v426_v5 = vld [vmem:[#allocation7 + $0x38] sm:$0xff]   ;;  %v421_v6 = vld [vmem:[#allocation5 + $0x20] sm:$0xff]   ;;  %vm323_vm1 = vcmask 7168  }
  0x2c   :  { %389 = vmatprep.subr.bf16.mxu1 %v513_v1  ;;  %405 = vmatprep.mubr.msk.bf16.mxu1 %vm514_vm0, %v513_v1  ;;  %v427_v7 = vld [vmem:[#allocation7 + $0x30] sm:$0xff]   ;;  %v422_v8 = vld [vmem:[#allocation5 + $0x18] sm:$0xff]   ;;  %v424_v10 = vld [vmem:[#allocation5 + $0x8] sm:$0xff]   ;;  %v306_v38 = vshrl.u32 %v305_v34, 7 }
  0x2d   :  { %370 = vmatpush3.bf16.msra.mxu0 %v418_v2  ;;  %390 = vmatpush3.bf16.msra.mxu1 %v426_v5  ;;  %v423_v9 = vld [vmem:[#allocation5 + $0x10] sm:$0xff]   ;;  %v425_v11 = vld [vmem:[#allocation5] sm:$0xff]   ;;  %v71_v13 = vld [vmem:[#allocation3 + $0x8] sm:$0xff] }
  0x2e   :  { %371 = vmatprep.subr.bf16.mxu0 %v513_v1  ;;  %391 = vmatprep.subr.bf16.mxu1 %v513_v1  ;;  %v70_v12 = vld [vmem:[#allocation3] sm:$0xff]  ;;  %v428_v15 = vld [vmem:[#allocation7 + $0x28] sm:$0xff]   ;;  %v429_v16 = vld [vmem:[#allocation7 + $0x20] sm:$0xff]   ;;  %v307_v42 = vsub.s32 0, %v306_v38 }
  0x2f   :  { %v89_v14 = vpack.c.bf16 %v71_v13, %v70_v12  ;;  %v430_v17 = vld [vmem:[#allocation7 + $0x18] sm:$0xff]   ;;  %v431_v18 = vld [vmem:[#allocation7 + $0x10] sm:$0xff]   ;;  %v432_v19 = vld [vmem:[#allocation7 + $0x8] sm:$0xff]  }
  0x30   :  { %v433_v20 = vld [vmem:[#allocation7] sm:$0xff]   ;;  %v332_v21 = vld [vmem:[%s584_s2] ss:$0 sm:$0xff] }
  0x31   :  { %372 = vmatpush3.bf16.msra.mxu0 %v419_v3  ;;  %392 = vmatpush3.bf16.msra.mxu1 %v427_v7  ;;  %v341_v31 = vld [vmem:[%s586_s4] ss:$0 sm:$0xff] }
  0x32   :  { %373 = vmatprep.subr.bf16.mxu0 %v513_v1  ;;  %393 = vmatprep.subr.bf16.mxu1 %v513_v1  ;;  %v302_v40 = vld [vmem:[%s587_s5] sm:$0x1] }
  0x33   :  { %v304_v41 = vunpack.c.l.bf16 %v302_v40  ;;  %v350_v48 = vld [vmem:[#allocation2] ss:$0 sm:$0xff] }
  0x35   :  { %374 = vmatpush3.bf16.msra.mxu0 %v420_v4  ;;  %394 = vmatpush3.bf16.msra.mxu1 %v428_v15  ;;  %v308_v43 = vrot.slane %v304_v41, %v307_v42 }
  0x36   :  { %375 = vmatprep.subr.bf16.mxu0 %v513_v1  ;;  %395 = vmatprep.subr.bf16.mxu1 %v513_v1 }
  0x39   :  { %376 = vmatpush3.bf16.msra.mxu0 %v421_v6  ;;  %396 = vmatpush3.bf16.msra.mxu1 %v429_v16 }
  0x3a   :  { %377 = vmatprep.subr.bf16.mxu0 %v513_v1  ;;  %397 = vmatprep.subr.bf16.mxu1 %v513_v1 }
  0x3d   :  { %378 = vmatpush3.bf16.msra.mxu0 %v422_v8  ;;  %398 = vmatpush3.bf16.msra.mxu1 %v430_v17 }
  0x3e   :  { %379 = vmatprep.subr.bf16.mxu0 %v513_v1  ;;  %399 = vmatprep.subr.bf16.mxu1 %v513_v1 }
  0x41   :  { %380 = vmatpush3.bf16.msra.mxu0 %v423_v9  ;;  %400 = vmatpush3.bf16.msra.mxu1 %v431_v18 }
  0x42   :  { %381 = vmatprep.subr.bf16.mxu0 %v513_v1  ;;  %401 = vmatprep.subr.bf16.mxu1 %v513_v1 }
  0x45   :  { %382 = vmatpush3.bf16.msra.mxu0 %v424_v10  ;;  %402 = vmatpush3.bf16.msra.mxu1 %v432_v19 }
  0x46   :  { %383 = vmatprep.subr.bf16.mxu0 %v513_v1  ;;  %403 = vmatprep.subr.bf16.mxu1 %v513_v1 }
  0x49   :  { %384 = vmatpush3.bf16.msra.mxu0 %v425_v11  ;;  %404 = vmatpush3.bf16.msra.mxu1 %v433_v20 }
  0x4c   :  { %386 = vmatmul.mubr.bf16.vlgmr.msra.gmra.mxu0 %v89_v14 }
 0x10c   :  { %v178_v22 = vpop.f32.mrf.mxu0 }
 0x10d   :  { %v179_v23 = vadd.f32 %v332_v21, %v178_v22 }
 0x10e   :  { %v387_v24 = vpop.f32.mrf.mxu0 }
 0x10f   :  { %434 = vtanh.f32 %v179_v23 }
 0x110   :  { %v181_v25 = vpop.f32.mrf.mxu0 }
 0x111   :  { %v182_v26 = vadd.f32 %v332_v21, %v181_v25 }
 0x112   :  { %v388_v27 = vpop.f32.mrf.mxu0 }
 0x113   :  { %436 = vtanh.f32 %v182_v26 }
 0x11c   :  { %v435_v28 = vpop.eup %434 }
 0x120   :  { %v437_v29 = vpop.eup %436 }
 0x121   :  { %v204_v30 = vpack.c.bf16 %v437_v29, %v435_v28 }
 0x123   :  { %406 = vmatmul.mubr.bf16.vlgmr.msra.gmra.mxu1 %v204_v30 }
 0x1e3   :  { %v293_v32 = vpop.f32.mrf.mxu1 }
 0x1e4   :  { %v294_v33 = vadd.f32 %v341_v31, %v293_v32 }
 0x1e5   :  { %v407_v35 = vpop.f32.mrf.mxu1 }
 0x1e6   :  { %438 = vtanh.f32 %v294_v33 }
 0x1e7   :  { %v296_v36 = vpop.f32.mrf.mxu1 }
 0x1e8   :  { %v297_v37 = vadd.f32 %v341_v31, %v296_v36 }
 0x1e9   :  { %v408_v39 = vpop.f32.mrf.mxu1 }
 0x1ea   :  { %440 = vtanh.f32 %v297_v37 }
 0x1f3   :  { %v439_v44 = vpop.eup %438 }
 0x1f4   :  { %v309_v45 = vmul.f32 %v439_v44, %v308_v43 }
 0x1f6   :  { %311 = vadd.xlane.f32.xlu0 %v309_v45 }
 0x1f7   :  { %v441_v46 = vpop.eup %440 }
 0x1f8   :  { %v310_v47 = vmul.f32 %v441_v46, %v308_v43 }
 0x1fa   :  { %313 = vadd.xlane.f32.xlu0 %v310_v47 }
 0x27f   :  { %v312_v49 = vpop.xlane.xlu0 %311 }
 0x280   :  { %v321_v50 = vadd.f32 %v350_v48, %v312_v49 }
 0x282   :  { %324 = vst.msk [vmem:[%s589_s7] sm:$0xff] %vm323_vm1, %v321_v50 }
 0x283   :  { %v314_v51 = vpop.xlane.xlu0 %313 }
 0x284   :  { %v322_v52 = vadd.f32 %v350_v48, %v314_v51 }
 0x286   :  { %325 = vst.msk [vmem:[%s589_s7 + $0x8] sm:$0xff] %vm323_vm1, %v322_v52 }
 0x287   :  { %330 = vsyncpa [#allocation4], 1 }
 0x288   :  { %331 = vsyncpa [#allocation6], 1 }

</bundles_post_ra>
